<compile_context>
chip_gen: v7x
topology: tpu7x:2x2x1
jax: 0.10.0
libtpu: 0.0.40
codegen_flags: <defaults>
</compile_context>

<pallas_src>
import functools

import jax
import jax.numpy as jnp
from jax.experimental import pallas as pl
from jax.experimental.pallas import tpu as pltpu

_EPS = 1e-4


def _contrast_norm_kernel(x_ref, o_ref, *, l_true: int):
    # x_ref block: (block_rows, L_pad); lanes >= l_true are zero-padded.
    x = x_ref[...].astype(jnp.float32)
    l_pad = x.shape[-1]

    if l_pad == l_true:
        mu = jnp.mean(x, axis=-1, keepdims=True)
        d = x - mu
        var = jnp.mean(d * d, axis=-1, keepdims=True)
    else:
        inv_n = jnp.float32(1.0 / l_true)
        # Padded lanes hold zeros, so the raw sum is already the true sum.
        mu = jnp.sum(x, axis=-1, keepdims=True) * inv_n
        d = x - mu
        # Mask padded lanes out of the squared-deviation sum.
        lane = jax.lax.broadcasted_iota(jnp.int32, x.shape, dimension=1)
        mask = (lane < l_true).astype(jnp.float32)
        var = jnp.sum(d * d * mask, axis=-1, keepdims=True) * inv_n

    inv = jax.lax.rsqrt(var + _EPS)
    o_ref[...] = (d * inv).astype(o_ref.dtype)


def contrast_norm(
    x: jax.Array,
    *,
    block_rows: int | None = None,
    target_tile_bytes: int = 2 << 20,  # ~2 MiB f32 tile -> ~8 MiB w/ 4 buffers
) -> jax.Array:
    """x: (N, C, H, W) -> (N, C, H, W), per-(n,c) spatial contrast norm."""
    N, C, H, W = x.shape
    R, L = N * C, H * W
    x2d = x.reshape(R, L)

    # Lane-dense last dim: pad flattened spatial dim to a multiple of 128.
    L_pad = ((L + 127) // 128) * 128

    # Sublane multiple per I/O dtype (f32 -> 8, bf16 -> 16, int8 -> 32).
    itemsize = jnp.dtype(x.dtype).itemsize
    sub = max(8, 32 // max(itemsize, 1))

    if block_rows is None:
        # Size against the f32 intermediate (kernel upcasts), not I/O dtype.
        rows = max(sub, (target_tile_bytes // (L_pad * 4)) // sub * sub)
        block_rows = min(rows, ((R + sub - 1) // sub) * sub)
    else:
        block_rows = max(sub, ((block_rows + sub - 1) // sub) * sub)

    # Pad rows so every grid step sees a full, aligned tile (zero rows are
    # harmless: mu=0, var=0 -> output 0, then sliced off).
    R_pad = ((R + block_rows - 1) // block_rows) * block_rows

    if (R_pad, L_pad) != (R, L):
        x2d = jnp.pad(x2d, ((0, R_pad - R), (0, L_pad - L)))

    grid = (R_pad // block_rows,)
    kernel = functools.partial(_contrast_norm_kernel, l_true=L)

    out2d = pl.pallas_call(
        kernel,
        out_shape=jax.ShapeDtypeStruct((R_pad, L_pad), x.dtype),
        grid_spec=pltpu.PrefetchScalarGridSpec(
            num_scalar_prefetch=0,
            grid=grid,
            in_specs=[pl.BlockSpec((block_rows, L_pad), lambda i: (i, 0))],
            out_specs=pl.BlockSpec((block_rows, L_pad), lambda i: (i, 0)),
        ),
        compiler_params=pltpu.CompilerParams(
            dimension_semantics=("parallel",),
            vmem_limit_bytes=64 << 20,
        ),
    )(x2d)

    if (R_pad, L_pad) != (R, L):
        out2d = out2d[:R, :L]
    return out2d.reshape(N, C, H, W)


def _reference(x):
    mu = jnp.mean(x, axis=(-1, -2), keepdims=True)
    var = jnp.mean((x - mu) ** 2, axis=(-1, -2), keepdims=True)
    return (x - mu) / jnp.sqrt(var + _EPS)


if __name__ == "__main__":
    key = jax.random.PRNGKey(0)

    # Primary test shape (spatial dim 16*16=256 is already lane-dense).
    x = jax.random.normal(key, (2, 4, 16, 16), dtype=jnp.float32)
    out = contrast_norm(x)
    jax.block_until_ready(out)
    ref = _reference(x)
    assert out.shape == x.shape and out.dtype == x.dtype
    assert jnp.allclose(out, ref, atol=1e-5, rtol=1e-5), "mismatch vs reference"

    # Non-lane-dense spatial shape (7*7=49) exercises the padded/masked path.
    k2 = jax.random.PRNGKey(1)
    x2 = jax.random.normal(k2, (2, 4, 7, 7), dtype=jnp.float32)
    out2 = contrast_norm(x2)
    jax.block_until_ready(out2)
    ref2 = _reference(x2)
    assert out2.shape == x2.shape and out2.dtype == x2.dtype
    assert jnp.allclose(out2, ref2, atol=1e-5, rtol=1e-5), "padded-path mismatch"

    print("KERNEL_OK")
</pallas_src>

<mosaic_0001>
module attributes {stable_mosaic.version = 11 : i64} {
  func.func @_contrast_norm_kernel(%arg0: i32, %arg1: memref<8x256xf32, #tpu.memory_space<vmem>>, %arg2: memref<8x256xf32, #tpu.memory_space<vmem>>) attributes {dimension_semantics = [#tpu.dimension_semantics<parallel>], iteration_bounds = array<i64: 1>, scalar_prefetch = 0 : i64, scratch_operands = 0 : i64, tpu.core_type = #tpu.core_type<tc>, window_params = [{transform_indices = @transform_0, window_bounds = array<i64: 8, 256>}, {transform_indices = @transform_1, window_bounds = array<i64: 8, 256>}]} {
    %c0 = arith.constant 0 : index
    %c0_0 = arith.constant 0 : index
    %0 = vector.load %arg1[%c0, %c0_0] : memref<8x256xf32, #tpu.memory_space<vmem>>, vector<8x256xf32>
    %cst = arith.constant dense<0.000000e+00> : vector<8xf32>
    %1 = vector.multi_reduction <add>, %0, %cst [1] : vector<8x256xf32> to vector<8xf32>
    %2 = vector.shape_cast %1 : vector<8xf32> to vector<8x1xf32>
    %cst_1 = arith.constant 2.560000e+02 : f32
    %3 = vector.broadcast %cst_1 : f32 to vector<8x1xf32>
    %4 = arith.divf %2, %3 : vector<8x1xf32>
    %5 = vector.broadcast %4 : vector<8x1xf32> to vector<8x256xf32>
    %6 = arith.subf %0, %5 : vector<8x256xf32>
    %7 = arith.mulf %6, %6 : vector<8x256xf32>
    %cst_2 = arith.constant dense<0.000000e+00> : vector<8xf32>
    %8 = vector.multi_reduction <add>, %7, %cst_2 [1] : vector<8x256xf32> to vector<8xf32>
    %9 = vector.shape_cast %8 : vector<8xf32> to vector<8x1xf32>
    %cst_3 = arith.constant 2.560000e+02 : f32
    %10 = vector.broadcast %cst_3 : f32 to vector<8x1xf32>
    %11 = arith.divf %9, %10 : vector<8x1xf32>
    %cst_4 = arith.constant 9.99999974E-5 : f32
    %12 = vector.broadcast %cst_4 : f32 to vector<8x1xf32>
    %13 = arith.addf %11, %12 : vector<8x1xf32>
    %14 = math.rsqrt %13 : vector<8x1xf32>
    %15 = vector.broadcast %14 : vector<8x1xf32> to vector<8x256xf32>
    %16 = arith.mulf %6, %15 : vector<8x256xf32>
    %c0_5 = arith.constant 0 : index
    %c0_6 = arith.constant 0 : index
    %17 = vector.load %arg2[%c0_5, %c0_6] : memref<8x256xf32, #tpu.memory_space<vmem>>, vector<8x256xf32>
    tpu.vector_store %arg2[%c0_5, %c0_6], %16 {strides = array<i32>} : memref<8x256xf32, #tpu.memory_space<vmem>>, vector<8x256xf32>,
    return
  }
  func.func @transform_0(%arg0: i32) -> (i32, i32) {
    %c0_i32 = arith.constant 0 : i32
    %c0_i32_0 = arith.constant 0 : i32
    return %arg0, %c0_i32 : i32, i32
  }
  func.func @transform_1(%arg0: i32) -> (i32, i32) {
    %c0_i32 = arith.constant 0 : i32
    %c0_i32_0 = arith.constant 0 : i32
    return %arg0, %c0_i32 : i32, i32
  }
}

</mosaic_0001>

<bundles_post_ra>
// kernel: tpu_custom_call.1
= control target key start
LH: loop header
LB: loop body
LE: loop exit
PB: predicated region body
PF: predicated region fallthrough
CT: control target
= control target key end

     0   :  { %6 = vsyncpa [#allocation3], 0  ;;  %s145_s0 = inlined_call_operand.hbm [shape: f32[8,256], index: 0, kind: input, shape index: {}]   ;;  %s146_s1 = inlined_call_operand.hbm [shape: f32[8,256], index: 1, kind: output, shape index: {}]  }
   0x1   :  { %7 = vsyncpa [#allocation4], 0  ;;  %s109_s6 = smov [#allocation2]   ;;  %s61_s10 = scalar_lea.hbm %s145_s0, 256 }
   0x2   :  { %s14_s7 = sshll.u32 %s109_s6, 4  ;;  %p62_p0 = scmp.ne.s32.totalorder %s145_s0, %s61_s10  ;;  %s15_s7 = int_to_ptr.vmem [resolvable:$true] %s14_s7 }
   0x3   :  { %p65_p1 = scmp.lt.u32.totalorder %s61_s10, %s145_s0 }
   0x5   :  { %p67_p2 = pnand %p65_p1, %p62_p0 }
   0x7   :  { %70 = shalt.err (!%p67_p2)
}
   0x8   :  { %s71_s15 = scalar_lea.vmem %s15_s7, 256  ;;  %p76_p4 = scmp.lt.s32.totalorder %s15_s7, %s15_s7 }
   0x9   :  { %p72_p3 = scmp.ne.s32.totalorder %s15_s7, %s71_s15  ;;  %p77_p5 = scmp.lt.s32.totalorder %s71_s15, %s71_s15 }
   0xb   :  { %p78_p6 = por %p77_p5, %p76_p4 }
   0xd   :  { %p79_p7 = pnand %p78_p6, %p72_p3 }
   0xf   :  { %82 = shalt.err (!%p79_p7)
}
  0x10   :  { %17 = dma.hbm_to_vmem [thread:$0]  %s145_s0, 256, %s15_s7, [#allocation3]  }
  0x11   :  { %105 = dma.done.wait [#allocation3], 256  }
  0x12   :  { %106 = vsyncadd [#allocation3], 4294967040  ;;  %v21_v0 = vld [vmem:[#allocation2] sm:$0xff]  ;;  %v22_v1 = vld [vmem:[#allocation2 + $0x8] sm:$0xff]  ;;  %s110_s18 = smov [#allocation5]  }
  0x13   :  { %v23_v2 = vadd.f32 %v22_v1, %v21_v0  ;;  %s48_s0 = sshll.u32 %s110_s18, 4  ;;  %s49_s0 = int_to_ptr.vmem [resolvable:$true] %s48_s0 }
  0x14   :  { %s83_s19 = scalar_lea.vmem %s49_s0, 256  ;;  %p88_p9 = scmp.lt.s32.totalorder %s49_s0, %s49_s0 }
  0x15   :  { %24 = vadd.xlane.f32.xlu0 %v23_v2  ;;  %p84_p8 = scmp.ne.s32.totalorder %s49_s0, %s83_s19  ;;  %p89_p10 = scmp.lt.s32.totalorder %s83_s19, %s83_s19 }
  0x17   :  { %p90_p11 = por %p89_p10, %p88_p9 }
  0x19   :  { %p91_p12 = pnand %p90_p11, %p84_p8 }
  0xa2   :  { %v25_v3 = vpop.xlane.xlu0 %24 }
  0xa3   :  { %v27_v4 = vmul.f32 0.00390625, %v25_v3 }
  0xa5   :  { %v28_v5 = vsub.f32 %v21_v0, %v27_v4  ;;  %v29_v6 = vsub.f32 %v22_v1, %v27_v4 }
  0xa7   :  { %v30_v7 = vmul.f32 %v28_v5, %v28_v5  ;;  %v31_v8 = vmul.f32 %v29_v6, %v29_v6 }
  0xa9   :  { %v32_v9 = vadd.f32 %v31_v8, %v30_v7 }
  0xab   :  { %33 = vadd.xlane.f32.xlu0 %v32_v9 }
 0x138   :  { %v34_v10 = vpop.xlane.xlu0 %33 }
 0x139   :  { %v35_v11 = vmul.f32 0.00390625, %v34_v10 }
 0x13b   :  { %v36_v12 = vadd.f32 0.0001, %v35_v11 }
 0x13d   :  { %59 = vrsqrt.f32 %v36_v12 }
 0x147   :  { %v60_v13 = vpop.eup %59 }
 0x148   :  { %v38_v14 = vmul.f32 %v60_v13, %v28_v5  ;;  %v39_v15 = vmul.f32 %v60_v13, %v29_v6 }
 0x14a   :  { %40 = vst [vmem:[#allocation5] sm:$0xff] %v38_v14  ;;  %41 = vst [vmem:[#allocation5 + $0x8] sm:$0xff] %v39_v15 }
 0x14b   :  { %94 = shalt.err (!%p91_p12)
}
 0x14c   :  { %s95_s22 = scalar_lea.hbm %s146_s1, 256 }
 0x14d   :  { %p96_p13 = scmp.ne.s32.totalorder %s146_s1, %s95_s22  ;;  %p99_p0 = scmp.lt.u32.totalorder %s95_s22, %s146_s1 }
 0x14f   :  { %p101_p1 = pnand %p99_p0, %p96_p13 }
 0x151   :  { %104 = shalt.err (!%p101_p1)
}
 0x152   :  { %51 = dma.vmem_to_hbm [thread:$0]  %s49_s0, 256, %s146_s1, [#allocation4]  }
 0x153   :  { %107 = dma.done.wait [#allocation4], 256  }
 0x154   :  { %108 = vsyncadd [#allocation4], 4294967040 }
 0x155   :  { %55 = vsyncpa [#allocation3], 1 }
 0x156   :  { %56 = vsyncpa [#allocation4], 1 }

</bundles_post_ra>
